<compile_context>
chip_gen: v7x
topology: tpu7x:2x2x1
jax: 0.10.0
libtpu: 0.0.40
codegen_flags: <defaults>
</compile_context>

<pallas_src>
import functools
import math

import jax
import jax.numpy as jnp
from jax import lax
from jax.experimental import pallas as pl
from jax.experimental.pallas import tpu as pltpu


def _round_up(v, m):
    return (v + m - 1) // m * m


def _mlp_fused_kernel(x_ref, w_ref, o_ref, std_ref, *,
                      n_layers, batch, features, mm_dtype):
    """Single-step fused MLP.

    x_ref   : (Bp, Np) f32 VMEM   padded input activation
    w_ref   : (L, Np, Np) bf16 VMEM  all layer weights, (in, out) layout, zero-padded
    o_ref   : (Bp, Np) f32 VMEM   final activation
    std_ref : (L, 1)  f32 SMEM    per-layer unbiased std (scalar per layer)
    """
    Bp, Np = x_ref.shape
    count = float(batch * features)

    # Mask of the real (B, N) region.  Padded rows/cols of x_p and w_p are exactly
    # zero, so activations stay zero there; but (y - mean)^2 would not, hence mask.
    row = lax.broadcasted_iota(jnp.int32, (Bp, Np), 0)
    col = lax.broadcasted_iota(jnp.int32, (Bp, Np), 1)
    in_real = (row < batch) & (col < features)

    act = x_ref[...].astype(jnp.float32)

    # n_layers is static -> fully unrolled layer chain in one grid step.
    for l in range(n_layers):
        # x @ W on the MXU: bf16 operands, f32 accumulate.  W is pre-transposed to
        # (in, out) in prepare_weights, so no in-kernel transpose/relayout.
        y = jnp.dot(act.astype(mm_dtype), w_ref[l],
                    preferred_element_type=jnp.float32)
        y = jnp.maximum(y, 0.0)          # ReLU in f32 on the VPU
        act = y

        # Unbiased (ddof=1) std over the real (B, N) region, two-pass formula.
        mean = jnp.sum(y) / count                       # pads are exactly zero
        d = y - mean
        ssd = jnp.sum(jnp.where(in_real, d * d, 0.0))   # mask out padded region
        std_ref[l, 0] = jnp.sqrt(ssd / (count - 1.0))

    o_ref[...] = act.astype(o_ref.dtype)


def prepare_weights(weights, mm_dtype=jnp.bfloat16):
    """One-time preprocessing (hoisted out of the forward call path).

    weights : list of L arrays, each (N, N) in PyTorch nn.Linear (out, in) layout
    returns : (L, Np, Np) mm_dtype array, transposed to (in, out) and zero-padded
              to lane-dense (8, 128)-aligned tiles.
    """
    L = len(weights)
    N = weights[0].shape[0]
    Np = max(_round_up(N, 128), 128)
    # Transpose to (in, out) so the kernel does a plain x @ W; cast BEFORE padding
    # so padded entries are exactly zero in the stored dtype.
    w = jnp.swapaxes(jnp.stack(weights), 1, 2).astype(mm_dtype)
    return jnp.zeros((L, Np, Np), mm_dtype).at[:, :N, :N].set(w)


def mlp_forward(x, w_prepared):
    """Fused MLP forward (all layers, one pallas_call, one grid step).

    x          : (B, N) f32
    w_prepared : (L, Np, Np) from prepare_weights()
    returns    : (final activation (B, N) f32, per-layer unbiased stds (L,) f32)
    """
    B, N = x.shape
    L, Np, _ = w_prepared.shape

    Bp = max(_round_up(B, 8), 8)
    x_p = jnp.zeros((Bp, Np), jnp.float32).at[:B, :N].set(x)

    kernel = functools.partial(
        _mlp_fused_kernel,
        n_layers=L, batch=B, features=N, mm_dtype=w_prepared.dtype)

    out_p, stds2d = pl.pallas_call(
        kernel,
        out_shape=(
            jax.ShapeDtypeStruct((Bp, Np), jnp.float32),   # final activation
            jax.ShapeDtypeStruct((L, 1), jnp.float32),     # per-layer std scalars
        ),
        in_specs=[
            pl.BlockSpec(memory_space=pltpu.MemorySpace.VMEM),   # x_p (resident)
            pl.BlockSpec(memory_space=pltpu.MemorySpace.VMEM),   # all weights (resident)
        ],
        out_specs=(
            pl.BlockSpec(memory_space=pltpu.MemorySpace.VMEM),   # lane-dense activation
            pl.BlockSpec(memory_space=pltpu.MemorySpace.SMEM),   # scalar stds
        ),
    )(x_p, w_prepared)

    return out_p[:B, :N], stds2d[:, 0]


def init_weights(key, neural_num, layers):
    """Deterministic kaiming_normal_ (fan_in, gain=sqrt(2)), like MLP.initialize()."""
    std = (2.0 / neural_num) ** 0.5
    keys = jax.random.split(key, layers)
    return [std * jax.random.normal(k, (neural_num, neural_num), dtype=jnp.float32)
            for k in keys]


if __name__ == "__main__":
    neural_num = 32
    layers = 4
    batch = 2

    key = jax.random.PRNGKey(0)
    k_x, k_w = jax.random.split(key)

    x = jax.random.normal(k_x, (batch, neural_num), dtype=jnp.float32)
    weights = init_weights(k_w, neural_num, layers)

    # One-time weight preprocessing, hoisted out of the forward call path.
    w_prepared = prepare_weights(weights)

    fwd = jax.jit(mlp_forward)
    out, stds = fwd(x, w_prepared)
    jax.block_until_ready((out, stds))
    stds_host = jax.device_get(stds)   # single host sync for the whole forward

    for i in range(layers):
        s = float(stds_host[i])
        print('layer:{}, std:{}'.format(i, s))
        if math.isnan(s):
            print('output is nan in {} layers'.format(i))
            break
    # TODO(synk): exact torch break-on-NaN semantics (returning the activation at
    # the first NaN layer) would require per-layer activation capture; here all
    # layers always run on-device and only the printing loop breaks.

    # Reference check mirroring the kernel's bf16-operand / f32-accumulate matmul.
    ref = x
    ref_stds = []
    for wi in weights:
        ref = jnp.dot(ref.astype(jnp.bfloat16), wi.T.astype(jnp.bfloat16),
                      preferred_element_type=jnp.float32)
        ref = jnp.maximum(ref, 0.0)
        ref_stds.append(jnp.std(ref, ddof=1))
    ref_stds = jnp.stack(ref_stds)
    assert jnp.allclose(out, ref, rtol=1e-3, atol=1e-4), "activation mismatch vs reference"
    assert jnp.allclose(stds, ref_stds, rtol=1e-3, atol=1e-4), "std mismatch vs reference"

    # Looser check against the pure-f32 torch-equivalent math (bf16 operand rounding).
    ref32 = x
    for wi in weights:
        ref32 = jnp.maximum(ref32 @ wi.T, 0.0)
    assert jnp.allclose(out, ref32, rtol=1e-1, atol=1e-1), "drifted too far from f32 reference"

    print("KERNEL_OK")
</pallas_src>

<mosaic_0001>
module attributes {stable_mosaic.version = 11 : i64} {
  func.func @_mlp_fused_kernel(%arg0: memref<8x128xf32, #tpu.memory_space<vmem>>, %arg1: memref<4x128x128xbf16, #tpu.memory_space<vmem>>, %arg2: memref<8x128xf32, #tpu.memory_space<vmem>>, %arg3: memref<4x1xf32, #tpu.memory_space<smem>>) attributes {dimension_semantics = [], scalar_prefetch = 0 : i64, scratch_operands = 0 : i64, tpu.core_type = #tpu.core_type<tc>} {
    %0 = tpu.iota {dimensions = array<i32: 0>} : vector<8x128xi32>
    %1 = tpu.iota {dimensions = array<i32: 1>} : vector<8x128xi32>
    %c2_i32 = arith.constant 2 : i32
    %2 = vector.broadcast %c2_i32 : i32 to vector<8x128xi32>
    %3 = arith.cmpi slt, %0, %2 : vector<8x128xi32>
    %c32_i32 = arith.constant 32 : i32
    %4 = vector.broadcast %c32_i32 : i32 to vector<8x128xi32>
    %5 = arith.cmpi slt, %1, %4 : vector<8x128xi32>
    %6 = arith.andi %3, %5 : vector<8x128xi1>
    %c0 = arith.constant 0 : index
    %c0_0 = arith.constant 0 : index
    %7 = vector.load %arg0[%c0, %c0_0] : memref<8x128xf32, #tpu.memory_space<vmem>>, vector<8x128xf32>
    %8 = arith.truncf %7 : vector<8x128xf32> to vector<8x128xbf16>
    %c0_1 = arith.constant 0 : index
    %c0_2 = arith.constant 0 : index
    %c0_3 = arith.constant 0 : index
    %9 = vector.load %arg1[%c0_1, %c0_2, %c0_3] : memref<4x128x128xbf16, #tpu.memory_space<vmem>>, vector<1x128x128xbf16>
    %10 = vector.shape_cast %9 : vector<1x128x128xbf16> to vector<128x128xbf16>
    %cst = arith.constant dense<0.000000e+00> : vector<8x128xf32>
    %11 = tpu.matmul %8, %10, %cst {dimension_numbers = #tpu.dot_dimension_numbers<[1], [0], [0], [1], [0, 0, 1, 1], [], []>} : vector<8x128xbf16>, vector<128x128xbf16>, vector<8x128xf32> -> vector<8x128xf32>
    %cst_4 = arith.constant 0.000000e+00 : f32
    %12 = vector.broadcast %cst_4 : f32 to vector<8x128xf32>
    %13 = arith.maximumf %11, %12 : vector<8x128xf32>
    %14 = vector.shape_cast %13 : vector<8x128xf32> to vector<1x8x128xf32>
    %cst_5 = arith.constant dense<0.000000e+00> : vector<1xf32>
    %15 = vector.multi_reduction <add>, %14, %cst_5 [1, 2] : vector<1x8x128xf32> to vector<1xf32>
    %16 = vector.shape_cast %15 : vector<1xf32> to vector<1x1x1xf32>
    %17 = vector.extract %16[0, 0, 0] : f32 from vector<1x1x1xf32>
    %cst_6 = arith.constant 6.400000e+01 : f32
    %18 = arith.divf %17, %cst_6 : f32
    %19 = vector.broadcast %18 : f32 to vector<8x128xf32>
    %20 = arith.subf %13, %19 : vector<8x128xf32>
    %21 = arith.mulf %20, %20 : vector<8x128xf32>
    %cst_7 = arith.constant 0.000000e+00 : f32
    %22 = vector.broadcast %cst_7 : f32 to vector<8x128xf32>
    %23 = arith.select %6, %21, %22 : vector<8x128xi1>, vector<8x128xf32>
    %24 = vector.shape_cast %23 : vector<8x128xf32> to vector<1x8x128xf32>
    %cst_8 = arith.constant dense<0.000000e+00> : vector<1xf32>
    %25 = vector.multi_reduction <add>, %24, %cst_8 [1, 2] : vector<1x8x128xf32> to vector<1xf32>
    %26 = vector.shape_cast %25 : vector<1xf32> to vector<1x1x1xf32>
    %27 = vector.extract %26[0, 0, 0] : f32 from vector<1x1x1xf32>
    %cst_9 = arith.constant 6.300000e+01 : f32
    %28 = arith.divf %27, %cst_9 : f32
    %29 = math.sqrt %28 : f32
    %c0_10 = arith.constant 0 : index
    %c0_11 = arith.constant 0 : index
    %30 = memref.load %arg3[%c0_10, %c0_11] : memref<4x1xf32, #tpu.memory_space<smem>>
    memref.store %29, %arg3[%c0_10, %c0_11] : memref<4x1xf32, #tpu.memory_space<smem>>
    %31 = arith.truncf %13 : vector<8x128xf32> to vector<8x128xbf16>
    %c1 = arith.constant 1 : index
    %c0_12 = arith.constant 0 : index
    %c0_13 = arith.constant 0 : index
    %32 = vector.load %arg1[%c1, %c0_12, %c0_13] : memref<4x128x128xbf16, #tpu.memory_space<vmem>>, vector<1x128x128xbf16>
    %33 = vector.shape_cast %32 : vector<1x128x128xbf16> to vector<128x128xbf16>
    %cst_14 = arith.constant dense<0.000000e+00> : vector<8x128xf32>
    %34 = tpu.matmul %31, %33, %cst_14 {dimension_numbers = #tpu.dot_dimension_numbers<[1], [0], [0], [1], [0, 0, 1, 1], [], []>} : vector<8x128xbf16>, vector<128x128xbf16>, vector<8x128xf32> -> vector<8x128xf32>
    %cst_15 = arith.constant 0.000000e+00 : f32
    %35 = vector.broadcast %cst_15 : f32 to vector<8x128xf32>
    %36 = arith.maximumf %34, %35 : vector<8x128xf32>
    %37 = vector.shape_cast %36 : vector<8x128xf32> to vector<1x8x128xf32>
    %cst_16 = arith.constant dense<0.000000e+00> : vector<1xf32>
    %38 = vector.multi_reduction <add>, %37, %cst_16 [1, 2] : vector<1x8x128xf32> to vector<1xf32>
    %39 = vector.shape_cast %38 : vector<1xf32> to vector<1x1x1xf32>
    %40 = vector.extract %39[0, 0, 0] : f32 from vector<1x1x1xf32>
    %cst_17 = arith.constant 6.400000e+01 : f32
    %41 = arith.divf %40, %cst_17 : f32
    %42 = vector.broadcast %41 : f32 to vector<8x128xf32>
    %43 = arith.subf %36, %42 : vector<8x128xf32>
    %44 = arith.mulf %43, %43 : vector<8x128xf32>
    %cst_18 = arith.constant 0.000000e+00 : f32
    %45 = vector.broadcast %cst_18 : f32 to vector<8x128xf32>
    %46 = arith.select %6, %44, %45 : vector<8x128xi1>, vector<8x128xf32>
    %47 = vector.shape_cast %46 : vector<8x128xf32> to vector<1x8x128xf32>
    %cst_19 = arith.constant dense<0.000000e+00> : vector<1xf32>
    %48 = vector.multi_reduction <add>, %47, %cst_19 [1, 2] : vector<1x8x128xf32> to vector<1xf32>
    %49 = vector.shape_cast %48 : vector<1xf32> to vector<1x1x1xf32>
    %50 = vector.extract %49[0, 0, 0] : f32 from vector<1x1x1xf32>
    %cst_20 = arith.constant 6.300000e+01 : f32
    %51 = arith.divf %50, %cst_20 : f32
    %52 = math.sqrt %51 : f32
    %c1_21 = arith.constant 1 : index
    %c0_22 = arith.constant 0 : index
    %53 = memref.load %arg3[%c1_21, %c0_22] : memref<4x1xf32, #tpu.memory_space<smem>>
    memref.store %52, %arg3[%c1_21, %c0_22] : memref<4x1xf32, #tpu.memory_space<smem>>
    %54 = arith.truncf %36 : vector<8x128xf32> to vector<8x128xbf16>
    %c2 = arith.constant 2 : index
    %c0_23 = arith.constant 0 : index
    %c0_24 = arith.constant 0 : index
    %55 = vector.load %arg1[%c2, %c0_23, %c0_24] : memref<4x128x128xbf16, #tpu.memory_space<vmem>>, vector<1x128x128xbf16>
    %56 = vector.shape_cast %55 : vector<1x128x128xbf16> to vector<128x128xbf16>
    %cst_25 = arith.constant dense<0.000000e+00> : vector<8x128xf32>
    %57 = tpu.matmul %54, %56, %cst_25 {dimension_numbers = #tpu.dot_dimension_numbers<[1], [0], [0], [1], [0, 0, 1, 1], [], []>} : vector<8x128xbf16>, vector<128x128xbf16>, vector<8x128xf32> -> vector<8x128xf32>
    %cst_26 = arith.constant 0.000000e+00 : f32
    %58 = vector.broadcast %cst_26 : f32 to vector<8x128xf32>
    %59 = arith.maximumf %57, %58 : vector<8x128xf32>
    %60 = vector.shape_cast %59 : vector<8x128xf32> to vector<1x8x128xf32>
    %cst_27 = arith.constant dense<0.000000e+00> : vector<1xf32>
    %61 = vector.multi_reduction <add>, %60, %cst_27 [1, 2] : vector<1x8x128xf32> to vector<1xf32>
    %62 = vector.shape_cast %61 : vector<1xf32> to vector<1x1x1xf32>
    %63 = vector.extract %62[0, 0, 0] : f32 from vector<1x1x1xf32>
    %cst_28 = arith.constant 6.400000e+01 : f32
    %64 = arith.divf %63, %cst_28 : f32
    %65 = vector.broadcast %64 : f32 to vector<8x128xf32>
    %66 = arith.subf %59, %65 : vector<8x128xf32>
    %67 = arith.mulf %66, %66 : vector<8x128xf32>
    %cst_29 = arith.constant 0.000000e+00 : f32
    %68 = vector.broadcast %cst_29 : f32 to vector<8x128xf32>
    %69 = arith.select %6, %67, %68 : vector<8x128xi1>, vector<8x128xf32>
    %70 = vector.shape_cast %69 : vector<8x128xf32> to vector<1x8x128xf32>
    %cst_30 = arith.constant dense<0.000000e+00> : vector<1xf32>
    %71 = vector.multi_reduction <add>, %70, %cst_30 [1, 2] : vector<1x8x128xf32> to vector<1xf32>
    %72 = vector.shape_cast %71 : vector<1xf32> to vector<1x1x1xf32>
    %73 = vector.extract %72[0, 0, 0] : f32 from vector<1x1x1xf32>
    %cst_31 = arith.constant 6.300000e+01 : f32
    %74 = arith.divf %73, %cst_31 : f32
    %75 = math.sqrt %74 : f32
    %c2_32 = arith.constant 2 : index
    %c0_33 = arith.constant 0 : index
    %76 = memref.load %arg3[%c2_32, %c0_33] : memref<4x1xf32, #tpu.memory_space<smem>>
    memref.store %75, %arg3[%c2_32, %c0_33] : memref<4x1xf32, #tpu.memory_space<smem>>
    %77 = arith.truncf %59 : vector<8x128xf32> to vector<8x128xbf16>
    %c3 = arith.constant 3 : index
    %c0_34 = arith.constant 0 : index
    %c0_35 = arith.constant 0 : index
    %78 = vector.load %arg1[%c3, %c0_34, %c0_35] : memref<4x128x128xbf16, #tpu.memory_space<vmem>>, vector<1x128x128xbf16>
    %79 = vector.shape_cast %78 : vector<1x128x128xbf16> to vector<128x128xbf16>
    %cst_36 = arith.constant dense<0.000000e+00> : vector<8x128xf32>
    %80 = tpu.matmul %77, %79, %cst_36 {dimension_numbers = #tpu.dot_dimension_numbers<[1], [0], [0], [1], [0, 0, 1, 1], [], []>} : vector<8x128xbf16>, vector<128x128xbf16>, vector<8x128xf32> -> vector<8x128xf32>
    %cst_37 = arith.constant 0.000000e+00 : f32
    %81 = vector.broadcast %cst_37 : f32 to vector<8x128xf32>
    %82 = arith.maximumf %80, %81 : vector<8x128xf32>
    %83 = vector.shape_cast %82 : vector<8x128xf32> to vector<1x8x128xf32>
    %cst_38 = arith.constant dense<0.000000e+00> : vector<1xf32>
    %84 = vector.multi_reduction <add>, %83, %cst_38 [1, 2] : vector<1x8x128xf32> to vector<1xf32>
    %85 = vector.shape_cast %84 : vector<1xf32> to vector<1x1x1xf32>
    %86 = vector.extract %85[0, 0, 0] : f32 from vector<1x1x1xf32>
    %cst_39 = arith.constant 6.400000e+01 : f32
    %87 = arith.divf %86, %cst_39 : f32
    %88 = vector.broadcast %87 : f32 to vector<8x128xf32>
    %89 = arith.subf %82, %88 : vector<8x128xf32>
    %90 = arith.mulf %89, %89 : vector<8x128xf32>
    %cst_40 = arith.constant 0.000000e+00 : f32
    %91 = vector.broadcast %cst_40 : f32 to vector<8x128xf32>
    %92 = arith.select %6, %90, %91 : vector<8x128xi1>, vector<8x128xf32>
    %93 = vector.shape_cast %92 : vector<8x128xf32> to vector<1x8x128xf32>
    %cst_41 = arith.constant dense<0.000000e+00> : vector<1xf32>
    %94 = vector.multi_reduction <add>, %93, %cst_41 [1, 2] : vector<1x8x128xf32> to vector<1xf32>
    %95 = vector.shape_cast %94 : vector<1xf32> to vector<1x1x1xf32>
    %96 = vector.extract %95[0, 0, 0] : f32 from vector<1x1x1xf32>
    %cst_42 = arith.constant 6.300000e+01 : f32
    %97 = arith.divf %96, %cst_42 : f32
    %98 = math.sqrt %97 : f32
    %c3_43 = arith.constant 3 : index
    %c0_44 = arith.constant 0 : index
    %99 = memref.load %arg3[%c3_43, %c0_44] : memref<4x1xf32, #tpu.memory_space<smem>>
    memref.store %98, %arg3[%c3_43, %c0_44] : memref<4x1xf32, #tpu.memory_space<smem>>
    %c0_45 = arith.constant 0 : index
    %c0_46 = arith.constant 0 : index
    %100 = vector.load %arg2[%c0_45, %c0_46] : memref<8x128xf32, #tpu.memory_space<vmem>>, vector<8x128xf32>
    tpu.vector_store %arg2[%c0_45, %c0_46], %82 {strides = array<i32>} : memref<8x128xf32, #tpu.memory_space<vmem>>, vector<8x128xf32>,
    return
  }
}

</mosaic_0001>

<bundles_post_ra>
// kernel: mlp_forward.1
= control target key start
LH: loop header
LB: loop body
LE: loop exit
PB: predicated region body
PF: predicated region fallthrough
CT: control target
= control target key end

     0   :  { %9 = vsyncpa [#allocation3], 0  ;;  %s1013_s0 = inlined_call_operand.vmem [shape: f32[8,128], index: 0, kind: input, shape index: {}]   ;;  %s1014_s1 = inlined_call_operand.hbm [shape: bf16[4,128,128], index: 1, kind: input, shape index: {}]   ;;  %s1015_s2 = inlined_call_operand.vmem [shape: f32[8,128], index: 2, kind: output, shape index: {0}]   ;;  %s1016_s3 = inlined_call_operand.vmem [shape: f32[4,1], index: 3, kind: output, shape index: {1}]  }
   0x1   :  { %10 = vsyncpa [#allocation4], 0  ;;  %s897_s12 = smov [#allocation2]   ;;  %s859_s16 = scalar_lea.hbm %s1014_s1, 4096 }
   0x2   :  { %s18_s13 = sshll.u32 %s897_s12, 4  ;;  %p860_p0 = scmp.ne.s32.totalorder %s1014_s1, %s859_s16  ;;  %s19_s13 = int_to_ptr.vmem [resolvable:$true] %s18_s13 }
   0x3   :  { %p863_p1 = scmp.lt.u32.totalorder %s859_s16, %s1014_s1 }
   0x5   :  { %p865_p2 = pnand %p863_p1, %p860_p0 }
   0x7   :  { %868 = shalt.err (!%p865_p2)
}
   0x8   :  { %s869_s21 = scalar_lea.vmem %s19_s13, 4096  ;;  %p874_p4 = scmp.lt.s32.totalorder %s19_s13, %s19_s13 }
   0x9   :  { %p870_p3 = scmp.ne.s32.totalorder %s19_s13, %s869_s21  ;;  %p875_p5 = scmp.lt.s32.totalorder %s869_s21, %s869_s21 }
   0xb   :  { %p876_p6 = por %p875_p5, %p874_p4 }
   0xd   :  { %p877_p7 = pnand %p876_p6, %p870_p3 }
   0xf   :  { %880 = shalt.err (!%p877_p7)
}
  0x10   :  { %s898_s22 = smov 64   ;;  %s899_s23 = smov 4  }
  0x11   :  { %24 = dma.hbm_to_vmem [thread:$0]  %s1014_s1, 4096, %s19_s13, [#allocation3], %s898_s22, %s898_s22, %s899_s23  }
  0x12   :  { %893 = dma.done.wait [#allocation3], 4096  }
  0x13   :  { %894 = vsyncadd [#allocation3], 4294963200  ;;  %v900_v0 = vmov 0.0   ;;  %vm901_vm0 = vmmov 0   ;;  %v819_v1 = vld [vmem:[#allocation2] sm:$0xff]   ;;  %v820_v2 = vld [vmem:[#allocation2 + $0x8] sm:$0xff]   ;;  %v29_v40 = vlaneseq }
  0x14   :  { %709 = vmatprep.subr.bf16.mxu0 %v900_v0  ;;  %725 = vmatprep.mubr.msk.bf16.mxu0 %vm901_vm0, %v900_v0  ;;  %v821_v3 = vld [vmem:[#allocation2 + $0x10] sm:$0xff]   ;;  %v827_v4 = vld [vmem:[#allocation2 + $0x40] sm:$0xff]   ;;  %v822_v5 = vld [vmem:[#allocation2 + $0x18] sm:$0xff]   ;;  %s629_s21 = sshll.u32 %s1016_s3, 4  ;;  %s630_s21 = int_to_ptr.vmem [resolvable:$true] %s629_s21 }
  0x15   :  { %729 = vmatprep.subr.bf16.mxu1 %v900_v0  ;;  %745 = vmatprep.mubr.msk.bf16.mxu1 %vm901_vm0, %v900_v0  ;;  %v828_v6 = vld [vmem:[#allocation2 + $0x48] sm:$0xff]   ;;  %v823_v7 = vld [vmem:[#allocation2 + $0x20] sm:$0xff]   ;;  %v829_v8 = vld [vmem:[#allocation2 + $0x50] sm:$0xff]   ;;  %v30_v41 = vshrl.u32 %v29_v40, 7  ;;  %v32_v42 = vand.u32 127, %v29_v40  ;;  %s881_s23 = scalar_lea.vmem %s630_s21, 64  ;;  %p886_p9 = scmp.lt.s32.totalorder %s630_s21, %s630_s21 }
  0x16   :  { %710 = vmatpush3.bf16.msra.mxu0 %v819_v1  ;;  %730 = vmatpush3.bf16.msra.mxu1 %v827_v4  ;;  %v824_v9 = vld [vmem:[#allocation2 + $0x28] sm:$0xff]   ;;  %v830_v10 = vld [vmem:[#allocation2 + $0x58] sm:$0xff]   ;;  %v825_v11 = vld [vmem:[#allocation2 + $0x30] sm:$0xff]   ;;  %p882_p8 = scmp.ne.s32.totalorder %s630_s21, %s881_s23  ;;  %p887_p10 = scmp.lt.s32.totalorder %s881_s23, %s881_s23 }
  0x17   :  { %711 = vmatprep.subr.bf16.mxu0 %v900_v0  ;;  %731 = vmatprep.subr.bf16.mxu1 %v900_v0  ;;  %v831_v12 = vld [vmem:[#allocation2 + $0x60] sm:$0xff]   ;;  %v826_v13 = vld [vmem:[#allocation2 + $0x38] sm:$0xff]   ;;  %v832_v15 = vld [vmem:[#allocation2 + $0x68] sm:$0xff]   ;;  %vm33_vm1 = vcmp.lt.s32.totalorder %v30_v41, 2  ;;  %vm34_vm2 = vcmp.lt.s32.totalorder %v32_v42, 32 }
  0x18   :  { %v36_v14 = vld [vmem:[%s1013_s0] sm:$0xff]  ;;  %v833_v17 = vld [vmem:[#allocation2 + $0x70] sm:$0xff]   ;;  %v834_v18 = vld [vmem:[#allocation2 + $0x78] sm:$0xff]   ;;  %p888_p11 = por %p887_p10, %p886_p9 }
  0x19   :  { %v37_v16 = vpack.c.bf16 %v36_v14, %v36_v14  ;;  %v835_v25 = vld [vmem:[#allocation2 + $0x80] sm:$0xff]   ;;  %v836_v26 = vld [vmem:[#allocation2 + $0x88] sm:$0xff]   ;;  %v837_v27 = vld [vmem:[#allocation2 + $0x90] sm:$0xff]  }
  0x1a   :  { %712 = vmatpush3.bf16.msra.mxu0 %v820_v2  ;;  %732 = vmatpush3.bf16.msra.mxu1 %v828_v6  ;;  %v838_v28 = vld [vmem:[#allocation2 + $0x98] sm:$0xff]   ;;  %v839_v29 = vld [vmem:[#allocation2 + $0xa0] sm:$0xff]   ;;  %v840_v30 = vld [vmem:[#allocation2 + $0xa8] sm:$0xff]   ;;  %p889_p12 = pnand %p888_p11, %p882_p8 }
  0x1b   :  { %713 = vmatprep.subr.bf16.mxu0 %v900_v0  ;;  %733 = vmatprep.subr.bf16.mxu1 %v900_v0  ;;  %v841_v31 = vld [vmem:[#allocation2 + $0xb0] sm:$0xff]   ;;  %v842_v32 = vld [vmem:[#allocation2 + $0xb8] sm:$0xff]   ;;  %vm971_vm3 = vmand %vm33_vm1, %vm34_vm2 }
  0x1c   :  { %v843_v54 = vld [vmem:[#allocation2 + $0xc0] sm:$0xff]   ;;  %v844_v55 = vld [vmem:[#allocation2 + $0xc8] sm:$0xff]   ;;  %v845_v56 = vld [vmem:[#allocation2 + $0xd0] sm:$0xff]  }
  0x1d   :  { %v846_v57 = vld [vmem:[#allocation2 + $0xd8] sm:$0xff]   ;;  %v847_v58 = vld [vmem:[#allocation2 + $0xe0] sm:$0xff]   ;;  %v848_v59 = vld [vmem:[#allocation2 + $0xe8] sm:$0xff]  }
  0x1e   :  { %714 = vmatpush3.bf16.msra.mxu0 %v821_v3  ;;  %734 = vmatpush3.bf16.msra.mxu1 %v829_v8  ;;  %v849_v60 = vld [vmem:[#allocation2 + $0xf0] sm:$0xff]   ;;  %v850_v61 = vld [vmem:[#allocation2 + $0xf8] sm:$0xff]  }
  0x1f   :  { %715 = vmatprep.subr.bf16.mxu0 %v900_v0  ;;  %735 = vmatprep.subr.bf16.mxu1 %v900_v0 }
  0x22   :  { %716 = vmatpush3.bf16.msra.mxu0 %v822_v5  ;;  %736 = vmatpush3.bf16.msra.mxu1 %v830_v10 }
  0x23   :  { %717 = vmatprep.subr.bf16.mxu0 %v900_v0  ;;  %737 = vmatprep.subr.bf16.mxu1 %v900_v0 }
  0x26   :  { %718 = vmatpush3.bf16.msra.mxu0 %v823_v7  ;;  %738 = vmatpush3.bf16.msra.mxu1 %v831_v12 }
  0x27   :  { %719 = vmatprep.subr.bf16.mxu0 %v900_v0  ;;  %739 = vmatprep.subr.bf16.mxu1 %v900_v0 }
  0x2a   :  { %720 = vmatpush3.bf16.msra.mxu0 %v824_v9  ;;  %740 = vmatpush3.bf16.msra.mxu1 %v832_v15 }
  0x2b   :  { %721 = vmatprep.subr.bf16.mxu0 %v900_v0  ;;  %741 = vmatprep.subr.bf16.mxu1 %v900_v0 }
  0x2e   :  { %722 = vmatpush3.bf16.msra.mxu0 %v825_v11  ;;  %742 = vmatpush3.bf16.msra.mxu1 %v833_v17 }
  0x2f   :  { %723 = vmatprep.subr.bf16.mxu0 %v900_v0  ;;  %743 = vmatprep.subr.bf16.mxu1 %v900_v0 }
  0x32   :  { %724 = vmatpush3.bf16.msra.mxu0 %v826_v13  ;;  %744 = vmatpush3.bf16.msra.mxu1 %v834_v18 }
  0x33   :  { %749 = vmatprep.subr.bf16.mxu0 %v900_v0  ;;  %769 = vmatprep.subr.bf16.mxu1 %v900_v0 }
  0x35   :  { %726 = vmatmul.mubr.bf16.vlgmr.msra.gmra.mrb[0].mxu0 %v37_v16 }
  0x36   :  { %765 = vmatprep.mubr.msk.bf16.mxu0 %vm901_vm0, %v900_v0  ;;  %750 = vmatpush3.bf16.msra.mxu0 %v835_v25 }
  0x37   :  { %751 = vmatprep.subr.bf16.mxu0 %v900_v0 }
  0x3a   :  { %752 = vmatpush3.bf16.msra.mxu0 %v836_v26 }
  0x3b   :  { %753 = vmatprep.subr.bf16.mxu0 %v900_v0 }
  0x3e   :  { %754 = vmatpush3.bf16.msra.mxu0 %v837_v27 }
  0x3f   :  { %755 = vmatprep.subr.bf16.mxu0 %v900_v0 }
  0x42   :  { %756 = vmatpush3.bf16.msra.mxu0 %v838_v28 }
  0x43   :  { %757 = vmatprep.subr.bf16.mxu0 %v900_v0 }
  0x46   :  { %758 = vmatpush3.bf16.msra.mxu0 %v839_v29 }
  0x47   :  { %759 = vmatprep.subr.bf16.mxu0 %v900_v0 }
  0x4a   :  { %760 = vmatpush3.bf16.msra.mxu0 %v840_v30 }
  0x4b   :  { %761 = vmatprep.subr.bf16.mxu0 %v900_v0 }
  0x4e   :  { %762 = vmatpush3.bf16.msra.mxu0 %v841_v31 }
  0x4f   :  { %763 = vmatprep.subr.bf16.mxu0 %v900_v0 }
  0x52   :  { %764 = vmatpush3.bf16.msra.mxu0 %v842_v32 }
 0x108   :  { %v136_v19 = vpop.f32.mrb[0].mxu0 }
 0x109   :  { %v142_v20 = vmax.f32 %v136_v19, 0.0  ;;  %v727_v21 = vpop.f32.mrb[1].mxu0 }
 0x10a   :  { %v139_v22 = vpop.f32.mrb[2].mxu0 }
 0x10b   :  { %143 = vadd.xlane.f32.xlu0 %v142_v20  ;;  %v728_v23 = vpop.f32.mrb[3].mxu0  ;;  %v182_v24 = vpack.c.bf16 %v142_v20, %v142_v20 }
 0x10d   :  { %746 = vmatmul.mubr.bf16.vlgmr.msra.gmra.mrb[0].mxu1 %v182_v24 }
 0x10e   :  { %785 = vmatprep.mubr.msk.bf16.mxu1 %vm901_vm0, %v900_v0  ;;  %770 = vmatpush3.bf16.msra.mxu1 %v843_v54 }
 0x10f   :  { %771 = vmatprep.subr.bf16.mxu1 %v900_v0 }
 0x112   :  { %772 = vmatpush3.bf16.msra.mxu1 %v844_v55 }
 0x113   :  { %773 = vmatprep.subr.bf16.mxu1 %v900_v0 }
 0x116   :  { %774 = vmatpush3.bf16.msra.mxu1 %v845_v56 }
 0x117   :  { %775 = vmatprep.subr.bf16.mxu1 %v900_v0 }
 0x11a   :  { %776 = vmatpush3.bf16.msra.mxu1 %v846_v57 }
 0x11b   :  { %777 = vmatprep.subr.bf16.mxu1 %v900_v0 }
 0x11e   :  { %778 = vmatpush3.bf16.msra.mxu1 %v847_v58 }
 0x11f   :  { %779 = vmatprep.subr.bf16.mxu1 %v900_v0 }
 0x122   :  { %780 = vmatpush3.bf16.msra.mxu1 %v848_v59 }
 0x123   :  { %781 = vmatprep.subr.bf16.mxu1 %v900_v0 }
 0x126   :  { %782 = vmatpush3.bf16.msra.mxu1 %v849_v60 }
 0x127   :  { %783 = vmatprep.subr.bf16.mxu1 %v900_v0 }
 0x12a   :  { %784 = vmatpush3.bf16.msra.mxu1 %v850_v61 }
 0x198   :  { %v144_v33 = vpop.xlane.xlu0 %143 }
 0x199   :  { %v145_v34 = vrot.slane %v144_v33, 4 }
 0x19b   :  { %v146_v35 = vadd.f32 %v145_v34, %v144_v33 }
 0x19d   :  { %v147_v36 = vrot.slane %v146_v35, 2 }
 0x19f   :  { %v148_v37 = vadd.f32 %v147_v36, %v146_v35 }
 0x1a1   :  { %v149_v38 = vrot.slane %v148_v37, 1 }
 0x1a3   :  { %v150_v39 = vadd.f32 %v149_v38, %v148_v37 }
 0x1a5   :  { %789 = vpush %v150_v39 }
 0x1d6   :  { %s790_s0 = spop %789 }
 0x1d7   :  { %s154_s27 = smul.f32 0.015625, %s790_s0 }
 0x1d9   :  { %v155_v43 = vstv %s154_s27 }
 0x1da   :  { %v156_v44 = vsub.f32 %v142_v20, %v155_v43 }
 0x1dc   :  { %v157_v46 = vmul.f32 %v156_v44, %v156_v44 }
 0x1de   :  { %v158_v47 = vsel %vm971_vm3, %v157_v46, 0.0 }
 0x1df   :  { %159 = vadd.xlane.f32.xlu0 %v158_v47 }
 0x1e0   :  { %v282_v48 = vpop.f32.mrb[0].mxu1 }
 0x1e1   :  { %v977_v49 = vmax.f32 %v282_v48, 0.0  ;;  %v747_v50 = vpop.f32.mrb[1].mxu1 }
 0x1e2   :  { %v285_v51 = vpop.f32.mrb[2].mxu1 }
 0x1e3   :  { %v328_v52 = vpack.c.bf16 %v977_v49, %v977_v49  ;;  %289 = vadd.xlane.f32.xlu1 %v977_v49  ;;  %v748_v53 = vpop.f32.mrb[3].mxu1 }
 0x1e5   :  { %766 = vmatmul.mubr.bf16.vlgmr.msra.gmra.mrb[4].mxu0 %v328_v52 }
 0x26c   :  { %v160_v62 = vpop.xlane.xlu0 %159 }
 0x26d   :  { %v161_v63 = vrot.slane %v160_v62, 4 }
 0x26f   :  { %v162_v1 = vadd.f32 %v161_v63, %v160_v62 }
 0x270   :  { %v290_v6 = vpop.xlane.xlu1 %289 }
 0x271   :  { %v163_v2 = vrot.slane %v162_v1, 2  ;;  %v291_v7 = vrot.slane %v290_v6, 4 }
 0x273   :  { %v164_v3 = vadd.f32 %v163_v2, %v162_v1  ;;  %v292_v8 = vadd.f32 %v291_v7, %v290_v6 }
 0x275   :  { %v165_v4 = vrot.slane %v164_v3, 1  ;;  %v293_v10 = vrot.slane %v292_v8, 2 }
 0x277   :  { %v166_v5 = vadd.f32 %v165_v4, %v164_v3  ;;  %v294_v11 = vadd.f32 %v293_v10, %v292_v8 }
 0x279   :  { %791 = vpush %v166_v5  ;;  %v295_v13 = vrot.slane %v294_v11, 1 }
 0x27b   :  { %v296_v23 = vadd.f32 %v295_v13, %v294_v11 }
 0x2aa   :  { %s792_s28 = spop %791 }
 0x2ab   :  { %s170_s29 = smul.f32 0.015873017, %s792_s28 }
 0x2ad   :  { %v171_v9 = vstv %s170_s29 }
 0x2ae   :  { %851 = vrsqrt.f32 %v171_v9  ;;  %vm174_vm4 = vcmp.eq.f32.partialorder %v171_v9, inf  ;;  %v177_v18 = vand.u32 2147483648, %v171_v9  ;;  %vm176_vm5 = vcmp.eq.f32.partialorder %v171_v9, 0.0 }
 0x2b8   :  { %v852_v0 = vpop.eup %851  ;;  %v428_v12 = vpop.f32.mrb[4].mxu0 }
 0x2b9   :  { %v989_v14 = vmax.f32 %v428_v12, 0.0  ;;  %v767_v15 = vpop.f32.mrb[5].mxu0  ;;  %v173_v16 = vmul.f32 %v852_v0, %v171_v9 }
 0x2ba   :  { %v431_v17 = vpop.f32.mrb[6].mxu0 }
 0x2bb   :  { %v474_v19 = vpack.c.bf16 %v989_v14, %v989_v14  ;;  %435 = vadd.xlane.f32.xlu0 %v989_v14  ;;  %v768_v20 = vpop.f32.mrb[7].mxu0  ;;  %v175_v21 = vsel %vm174_vm4, %v171_v9, %v173_v16 }
 0x2bc   :  { %v178_v22 = vsel %vm176_vm5, %v177_v18, %v175_v21 }
 0x2bd   :  { %793 = vpush %v178_v22  ;;  %786 = vmatmul.mubr.bf16.vlgmr.msra.gmra.mrb[4].mxu1 %v474_v19 }
 0x2be   :  { %795 = vpush %v296_v23 }
 0x2ee   :  { %s794_s30 = spop %793 }
 0x2ef   :  { %181 = sst [smem:[#allocation5]] %s794_s30  ;;  %s796_s4 = spop %795 }
 0x2f0   :  { %s300_s5 = smul.f32 0.015625, %s796_s4 }
 0x2f2   :  { %v301_v24 = vstv %s300_s5 }
 0x2f3   :  { %v302_v25 = vsub.f32 %v977_v49, %v301_v24 }
 0x2f5   :  { %v303_v26 = vmul.f32 %v302_v25, %v302_v25 }
 0x2f7   :  { %v304_v27 = vsel %vm971_vm3, %v303_v26, 0.0 }
 0x2f8   :  { %305 = vadd.xlane.f32.xlu1 %v304_v27 }
 0x348   :  { %v436_v40 = vpop.xlane.xlu0 %435 }
 0x349   :  { %v437_v41 = vrot.slane %v436_v40, 4 }
 0x34b   :  { %v438_v42 = vadd.f32 %v437_v41, %v436_v40 }
 0x34d   :  { %v439_v44 = vrot.slane %v438_v42, 2 }
 0x34f   :  { %v440_v46 = vadd.f32 %v439_v44, %v438_v42 }
 0x351   :  { %v441_v48 = vrot.slane %v440_v46, 1 }
 0x353   :  { %v442_v53 = vadd.f32 %v441_v48, %v440_v46 }
 0x385   :  { %v306_v28 = vpop.xlane.xlu1 %305 }
 0x386   :  { %v307_v29 = vrot.slane %v306_v28, 4 }
 0x388   :  { %v308_v30 = vadd.f32 %v307_v29, %v306_v28 }
 0x38a   :  { %v309_v31 = vrot.slane %v308_v30, 2 }
 0x38c   :  { %v310_v32 = vadd.f32 %v309_v31, %v308_v30 }
 0x38e   :  { %v311_v33 = vrot.slane %v310_v32, 1 }
 0x390   :  { %v574_v34 = vpop.f32.mrb[4].mxu1  ;;  %v312_v35 = vadd.f32 %v311_v33, %v310_v32 }
 0x391   :  { %v997_v36 = vmax.f32 %v574_v34, 0.0  ;;  %v787_v37 = vpop.f32.mrb[5].mxu1 }
 0x392   :  { %797 = vpush %v312_v35  ;;  %v577_v38 = vpop.f32.mrb[6].mxu1 }
 0x393   :  { %620 = vst [vmem:[%s1015_s2] sm:$0xff] %v997_v36  ;;  %581 = vadd.xlane.f32.xlu0 %v997_v36  ;;  %v788_v39 = vpop.f32.mrb[7].mxu1 }
 0x3c3   :  { %s798_s8 = spop %797 }
 0x3c4   :  { %s316_s9 = smul.f32 0.015873017, %s798_s8 }
 0x3c6   :  { %v317_v43 = vstv %s316_s9 }
 0x3c7   :  { %853 = vrsqrt.f32 %v317_v43  ;;  %vm320_vm6 = vcmp.eq.f32.partialorder %v317_v43, inf  ;;  %v323_v50 = vand.u32 2147483648, %v317_v43  ;;  %vm322_vm7 = vcmp.eq.f32.partialorder %v317_v43, 0.0 }
 0x3d1   :  { %v854_v47 = vpop.eup %853 }
 0x3d2   :  { %v319_v49 = vmul.f32 %v854_v47, %v317_v43 }
 0x3d4   :  { %v321_v51 = vsel %vm320_vm6, %v317_v43, %v319_v49 }
 0x3d5   :  { %v324_v52 = vsel %vm322_vm7, %v323_v50, %v321_v51 }
 0x3d6   :  { %799 = vpush %v324_v52 }
 0x3d7   :  { %801 = vpush %v442_v53 }
 0x407   :  { %s800_s2 = spop %799 }
 0x408   :  { %327 = sst [smem:[#allocation5 + $0x80]] %s800_s2  ;;  %s802_s10 = spop %801 }
 0x409   :  { %s446_s11 = smul.f32 0.015625, %s802_s10 }
 0x40b   :  { %v447_v54 = vstv %s446_s11 }
 0x40c   :  { %v448_v55 = vsub.f32 %v989_v14, %v447_v54 }
 0x40e   :  { %v449_v56 = vmul.f32 %v448_v55, %v448_v55 }
 0x410   :  { %v450_v57 = vsel %vm971_vm3, %v449_v56, 0.0 }
 0x411   :  { %451 = vadd.xlane.f32.xlu1 %v450_v57 }
 0x420   :  { %v582_v2 = vpop.xlane.xlu0 %581 }
 0x421   :  { %v583_v3 = vrot.slane %v582_v2, 4 }
 0x423   :  { %v584_v4 = vadd.f32 %v583_v3, %v582_v2 }
 0x425   :  { %v585_v6 = vrot.slane %v584_v4, 2 }
 0x427   :  { %v586_v7 = vadd.f32 %v585_v6, %v584_v4 }
 0x429   :  { %v587_v9 = vrot.slane %v586_v7, 1 }
 0x42b   :  { %v588_v13 = vadd.f32 %v587_v9, %v586_v7 }
 0x49e   :  { %v452_v58 = vpop.xlane.xlu1 %451 }
 0x49f   :  { %v453_v59 = vrot.slane %v452_v58, 4 }
 0x4a1   :  { %v454_v60 = vadd.f32 %v453_v59, %v452_v58 }
 0x4a3   :  { %v455_v61 = vrot.slane %v454_v60, 2 }
 0x4a5   :  { %v456_v62 = vadd.f32 %v455_v61, %v454_v60 }
 0x4a7   :  { %v457_v63 = vrot.slane %v456_v62, 1 }
 0x4a9   :  { %v458_v1 = vadd.f32 %v457_v63, %v456_v62 }
 0x4ab   :  { %803 = vpush %v458_v1 }
 0x4dc   :  { %s804_s12 = spop %803 }
 0x4dd   :  { %s462_s13 = smul.f32 0.015873017, %s804_s12 }
 0x4df   :  { %v463_v5 = vstv %s462_s13 }
 0x4e0   :  { %855 = vrsqrt.f32 %v463_v5  ;;  %vm466_vm8 = vcmp.eq.f32.partialorder %v463_v5, inf  ;;  %v469_v11 = vand.u32 2147483648, %v463_v5  ;;  %vm468_vm9 = vcmp.eq.f32.partialorder %v463_v5, 0.0 }
 0x4ea   :  { %v856_v8 = vpop.eup %855 }
 0x4eb   :  { %v465_v10 = vmul.f32 %v856_v8, %v463_v5 }
 0x4ed   :  { %v467_v0 = vsel %vm466_vm8, %v463_v5, %v465_v10 }
 0x4ee   :  { %v470_v12 = vsel %vm468_vm9, %v469_v11, %v467_v0 }
 0x4ef   :  { %805 = vpush %v470_v12 }
 0x4f0   :  { %807 = vpush %v588_v13 }
 0x520   :  { %s806_s14 = spop %805 }
 0x521   :  { %473 = sst [smem:[#allocation5 + $0x100]] %s806_s14  ;;  %s808_s15 = spop %807 }
 0x522   :  { %s592_s16 = smul.f32 0.015625, %s808_s15 }
 0x524   :  { %v593_v14 = vstv %s592_s16 }
 0x525   :  { %v594_v15 = vsub.f32 %v997_v36, %v593_v14 }
 0x527   :  { %v595_v16 = vmul.f32 %v594_v15, %v594_v15 }
 0x529   :  { %v596_v17 = vsel %vm971_vm3, %v595_v16, 0.0 }
 0x52a   :  { %597 = vadd.xlane.f32.xlu1 %v596_v17 }
 0x5b7   :  { %v598_v18 = vpop.xlane.xlu1 %597 }
 0x5b8   :  { %v599_v19 = vrot.slane %v598_v18, 4 }
 0x5ba   :  { %v600_v20 = vadd.f32 %v599_v19, %v598_v18 }
 0x5bc   :  { %v601_v21 = vrot.slane %v600_v20, 2 }
 0x5be   :  { %v602_v22 = vadd.f32 %v601_v21, %v600_v20 }
 0x5c0   :  { %v603_v23 = vrot.slane %v602_v22, 1 }
 0x5c2   :  { %v604_v24 = vadd.f32 %v603_v23, %v602_v22 }
 0x5c4   :  { %809 = vpush %v604_v24 }
 0x5f5   :  { %s810_s17 = spop %809 }
 0x5f6   :  { %s608_s18 = smul.f32 0.015873017, %s810_s17 }
 0x5f8   :  { %v609_v25 = vstv %s608_s18 }
 0x5f9   :  { %857 = vrsqrt.f32 %v609_v25  ;;  %vm612_vm10 = vcmp.eq.f32.partialorder %v609_v25, inf  ;;  %v615_v28 = vand.u32 2147483648, %v609_v25  ;;  %vm614_vm11 = vcmp.eq.f32.partialorder %v609_v25, 0.0 }
 0x603   :  { %v858_v26 = vpop.eup %857 }
 0x604   :  { %v611_v27 = vmul.f32 %v858_v26, %v609_v25 }
 0x606   :  { %v613_v29 = vsel %vm612_vm10, %v609_v25, %v611_v27 }
 0x607   :  { %v616_v45 = vsel %vm614_vm11, %v615_v28, %v613_v29 }
 0x608   :  { %811 = vpush %v616_v45 }
 0x639   :  { %s812_s22 = spop %811 }
 0x63a   :  { %619 = sst [smem:[#allocation5 + $0x180]] %s812_s22 }
 0x63b   :  { %892 = shalt.err (!%p889_p12)
}
 0x63c   :  { %s902_s24 = smov [#allocation5]  }
 0x63d   :  { %632 = dma.smem_to_vmem %s902_s24, 64, %s630_s21, [#allocation4]  }
 0x63e   :  { %895 = dma.done.wait [#allocation4], 64  }
 0x63f   :  { %896 = vsyncadd [#allocation4], 4294967232 }
 0x640   :  { %638 = sfence }
 0x641   :  { %639 = vsyncpa [#allocation3], 1 }
 0x642   :  { %640 = vsyncpa [#allocation4], 1 }

</bundles_post_ra>
